<compile_context>
chip_gen: v6e
topology: v6e:2x2x1
jax: 0.10.0
libtpu: 0.0.40
codegen_flags: <defaults>
</compile_context>

<pallas_src>
import functools

import jax
import jax.numpy as jnp
from jax import lax
from jax.experimental import pallas as pl
from jax.experimental.pallas import tpu as pltpu


@functools.lru_cache(maxsize=1)
def _vmem_limit_bytes():
    """Generation-aware scoped-VMEM budget (~70% of physical, with headroom)."""
    cap = 128 * 1024 * 1024
    try:
        info = pltpu.get_tpu_info()
        cap = int(getattr(info, "vmem_capacity_bytes", cap))
    except Exception:
        pass
    return max(32 * 1024 * 1024, min(int(cap * 0.7), 100 * 1024 * 1024))


# ----------------------------- kernels ---------------------------------------


def _qkv_rope_kernel(x_ref, cos_ref, sin_ref,
                     wq_ref, bq_ref, wqr_ref, bqr_ref,
                     wk_ref, bk_ref, wkr_ref, bkr_ref,
                     wv_ref, bv_ref,
                     q_ref, k_ref, v_ref, *, compute_dtype):
    x = x_ref[0].astype(compute_dtype)                       # (tn, D)
    cos = cos_ref[...]                                       # (tn, inner) f32
    sin = sin_ref[...]

    def proj(w_ref, b_ref):
        return jnp.dot(x, w_ref[...], preferred_element_type=jnp.float32) + b_ref[...]

    # rotary folded into pre-rotated weights: t*cos + rotate_half(t)*sin
    q = proj(wq_ref, bq_ref) * cos + proj(wqr_ref, bqr_ref) * sin
    k = proj(wk_ref, bk_ref) * cos + proj(wkr_ref, bkr_ref) * sin
    v = proj(wv_ref, bv_ref)
    q_ref[0] = q.astype(q_ref.dtype)
    k_ref[0] = k.astype(k_ref.dtype)
    v_ref[0] = v.astype(v_ref.dtype)


def _flash_attn_kernel(q_ref, k_ref, v_ref, o_ref, m_scr, l_scr, acc_scr,
                       *, tq, tk, compute_dtype):
    qi = pl.program_id(2)
    ki = pl.program_id(3)
    nk = pl.num_programs(3)

    @pl.when(ki == 0)
    def _init():
        m_scr[...] = jnp.full(m_scr.shape, -jnp.inf, dtype=m_scr.dtype)
        l_scr[...] = jnp.zeros(l_scr.shape, dtype=l_scr.dtype)
        acc_scr[...] = jnp.zeros(acc_scr.shape, dtype=acc_scr.dtype)

    def scores():
        # q/k are bf16 (already rotated & scaled) -> MXU, f32 accumulation
        return lax.dot_general(q_ref[0, 0], k_ref[0, 0],
                               (((1,), (1,)), ((), ())),
                               preferred_element_type=jnp.float32)     # (tq, tk)

    def online_softmax_update(s):
        m_prev = m_scr[...]
        m_new = jnp.maximum(m_prev, jnp.max(s, axis=-1, keepdims=True))
        alpha = jnp.exp(m_prev - m_new)
        p = jnp.exp(s - m_new)
        l_scr[...] = alpha * l_scr[...] + jnp.sum(p, axis=-1, keepdims=True)
        acc_scr[...] = alpha * acc_scr[...] + jnp.dot(
            p.astype(compute_dtype), v_ref[0, 0],
            preferred_element_type=jnp.float32)
        m_scr[...] = m_new

    # tq == tk: tiles strictly below the diagonal need no mask at all
    @pl.when(ki < qi)
    def _full_tile():
        online_softmax_update(scores())

    # diagonal-straddling tile: only place the causal mask is built/applied
    @pl.when(ki == qi)
    def _diag_tile():
        s = scores()
        row = lax.broadcasted_iota(jnp.int32, (tq, tk), 0)
        col = lax.broadcasted_iota(jnp.int32, (tq, tk), 1)
        s = jnp.where(col > row, -jnp.finfo(jnp.float32).max, s)
        online_softmax_update(s)

    # tiles with ki > qi: fully masked -> no compute and (via the clamped kv
    # index_map) no new DMA either.

    @pl.when(ki == nk - 1)
    def _finalize():
        inv_l = pl.reciprocal(l_scr[...], approx=True)
        o_ref[0, 0] = (acc_scr[...] * inv_l).astype(o_ref.dtype)


def _out_ffn_norm_kernel(o_ref, x_ref, wo_ref, bo_ref,
                         wi_ref, bi_ref, wg_ref, bg_ref,
                         w2_ref, b2_ref, lnw_ref, lnb_ref,
                         y_ref, acc_ref, *, scale_residual, compute_dtype, ln_eps):
    f = pl.program_id(1)
    nf = pl.num_programs(1)

    @pl.when(f == 0)
    def _init():
        # attention out-projection, computed once per row tile
        acc_ref[...] = (jnp.dot(o_ref[...].astype(compute_dtype), wo_ref[...],
                                preferred_element_type=jnp.float32) + bo_ref[...])

    # GEGLU FFN, ffi-chunked: never materializes (tm, ffi) intermediates in full
    xc = x_ref[...].astype(compute_dtype)
    h_in = jnp.dot(xc, wi_ref[...], preferred_element_type=jnp.float32) + bi_ref[...]
    h_gate = jnp.dot(xc, wg_ref[...], preferred_element_type=jnp.float32) + bg_ref[...]
    ff = (h_in * jax.nn.gelu(h_gate, approximate=False)).astype(compute_dtype)
    acc_ref[...] += jnp.dot(ff, w2_ref[...], preferred_element_type=jnp.float32)

    @pl.when(f == nf - 1)
    def _finalize():
        x_f32 = x_ref[...].astype(jnp.float32)
        y = acc_ref[...] + b2_ref[...] + x_f32 * scale_residual
        mean = jnp.mean(y, axis=-1, keepdims=True)
        var = jnp.mean(jnp.square(y - mean), axis=-1, keepdims=True)
        y = (y - mean) * lax.rsqrt(var + ln_eps)
        y_ref[...] = (y * lnw_ref[...] + lnb_ref[...]).astype(y_ref.dtype)


# ----------------------------- wrappers ---------------------------------------


def _pick_tile(n, target):
    if n <= target:
        return n
    for t in (2048, 1024, 512, 256, 128, 64, 32, 16, 8):
        if t <= target and n % t == 0:
            return t
    return n


def _qkv_rope_call(x3, p, cos_full, sin_full, *, compute_dtype, proj_block):
    B, N, D = x3.shape
    inner = p["wq"].shape[1]
    tn = proj_block

    def wfull(a):
        return pl.BlockSpec(a.shape, lambda b, i, _nd=a.ndim: (0,) * _nd)

    flops = 2 * B * N * D * inner * 5
    bytes_accessed = (4 * B * N * D + 2 * 5 * D * inner + 4 * 5 * inner
                      + 2 * 4 * N * inner + 2 * 3 * B * N * inner)
    return pl.pallas_call(
        functools.partial(_qkv_rope_kernel, compute_dtype=compute_dtype),
        grid=(B, N // tn),
        in_specs=[pl.BlockSpec((1, tn, D), lambda b, i: (b, i, 0)),
                  pl.BlockSpec((tn, inner), lambda b, i: (i, 0)),
                  pl.BlockSpec((tn, inner), lambda b, i: (i, 0)),
                  wfull(p["wq"]), wfull(p["bq"]), wfull(p["wq_r"]), wfull(p["bq_r"]),
                  wfull(p["wk"]), wfull(p["bk"]), wfull(p["wk_r"]), wfull(p["bk_r"]),
                  wfull(p["wv"]), wfull(p["bv"])],
        out_specs=tuple(pl.BlockSpec((1, tn, inner), lambda b, i: (b, i, 0))
                        for _ in range(3)),
        out_shape=tuple(jax.ShapeDtypeStruct((B, N, inner), compute_dtype)
                        for _ in range(3)),
        compiler_params=pltpu.CompilerParams(
            dimension_semantics=("parallel", "parallel"),
            vmem_limit_bytes=_vmem_limit_bytes()),
        cost_estimate=pl.CostEstimate(flops=int(flops), transcendentals=0,
                                      bytes_accessed=int(bytes_accessed)),
    )(x3, cos_full, sin_full,
      p["wq"], p["bq"], p["wq_r"], p["bq_r"],
      p["wk"], p["bk"], p["wk_r"], p["bk_r"],
      p["wv"], p["bv"])


def _attention_call(q4, k4, v4, *, compute_dtype, seq_block):
    B, H, N, d = q4.shape
    tq = tk = seq_block
    nq, nk = N // tq, N // tk

    qspec = pl.BlockSpec((1, 1, tq, d), lambda b, h, i, j: (b, h, i, 0))
    # clamp the kv block index at the diagonal: fully-masked tiles re-use the
    # previously fetched block, so no K/V DMA is wasted above the diagonal.
    kvspec = pl.BlockSpec((1, 1, tk, d),
                          lambda b, h, i, j: (b, h, jnp.minimum(j, i), 0))
    ospec = pl.BlockSpec((1, 1, tq, d), lambda b, h, i, j: (b, h, i, 0))

    flops = 2 * B * H * N * N * d * 2      # QK^T + PV (causal ~halves this)
    transcendentals = B * H * N * N // 2
    bytes_accessed = 2 * 4 * B * H * N * d

    return pl.pallas_call(
        functools.partial(_flash_attn_kernel, tq=tq, tk=tk,
                          compute_dtype=compute_dtype),
        grid=(B, H, nq, nk),
        in_specs=[qspec, kvspec, kvspec],
        out_specs=ospec,
        out_shape=jax.ShapeDtypeStruct((B, H, N, d), compute_dtype),
        scratch_shapes=[pltpu.VMEM((tq, 1), jnp.float32),
                        pltpu.VMEM((tq, 1), jnp.float32),
                        pltpu.VMEM((tq, d), jnp.float32)],
        compiler_params=pltpu.CompilerParams(
            dimension_semantics=("parallel", "parallel", "parallel", "arbitrary"),
            vmem_limit_bytes=_vmem_limit_bytes()),
        cost_estimate=pl.CostEstimate(flops=int(flops),
                                      transcendentals=int(transcendentals),
                                      bytes_accessed=int(bytes_accessed)),
    )(q4, k4, v4)


def _out_ffn_norm_call(o2, x2, p, *, scale_residual, compute_dtype, row_block,
                       ff_block):
    BN, D = x2.shape
    inner = o2.shape[1]
    ffi = p["w2"].shape[0]
    tm, tf = row_block, ff_block

    flops = 2 * BN * (inner * D + 3 * D * ffi)
    transcendentals = BN * ffi
    bytes_accessed = (2 * BN * inner + 4 * 2 * BN * D
                      + 2 * (inner * D + 3 * D * ffi) + 4 * (4 * D + 2 * ffi))

    return pl.pallas_call(
        functools.partial(_out_ffn_norm_kernel, scale_residual=scale_residual,
                          compute_dtype=compute_dtype, ln_eps=1e-5),
        grid=(BN // tm, ffi // tf),
        in_specs=[pl.BlockSpec((tm, inner), lambda i, f: (i, 0)),      # attn out
                  pl.BlockSpec((tm, D), lambda i, f: (i, 0)),          # residual x
                  pl.BlockSpec((inner, D), lambda i, f: (0, 0)),       # wo
                  pl.BlockSpec((1, D), lambda i, f: (0, 0)),           # bo
                  pl.BlockSpec((D, tf), lambda i, f: (0, f)),          # w_in
                  pl.BlockSpec((1, tf), lambda i, f: (0, f)),          # b_in
                  pl.BlockSpec((D, tf), lambda i, f: (0, f)),          # w_gate
                  pl.BlockSpec((1, tf), lambda i, f: (0, f)),          # b_gate
                  pl.BlockSpec((tf, D), lambda i, f: (f, 0)),          # w2
                  pl.BlockSpec((1, D), lambda i, f: (0, 0)),           # b2
                  pl.BlockSpec((1, D), lambda i, f: (0, 0)),           # lnw
                  pl.BlockSpec((1, D), lambda i, f: (0, 0))],          # lnb
        out_specs=pl.BlockSpec((tm, D), lambda i, f: (i, 0)),
        out_shape=jax.ShapeDtypeStruct((BN, D), jnp.float32),
        scratch_shapes=[pltpu.VMEM((tm, D), jnp.float32)],
        compiler_params=pltpu.CompilerParams(
            dimension_semantics=("parallel", "arbitrary"),
            vmem_limit_bytes=_vmem_limit_bytes()),
        cost_estimate=pl.CostEstimate(flops=int(flops),
                                      transcendentals=int(transcendentals),
                                      bytes_accessed=int(bytes_accessed)),
    )(o2, x2, p["wo"], p["bo"], p["w_in"], p["b_in"], p["w_gate"], p["b_gate"],
      p["w2"], p["b2"], p["lnw"], p["lnb"])


def transformer_layer(x, p, cos_full, sin_full, *, heads, dim_head,
                      scale_residual, compute_dtype, seq_block, proj_block,
                      row_block, ff_block):
    B, N, D = x.shape
    inner = heads * dim_head

    q, k, v = _qkv_rope_call(x, p, cos_full, sin_full,
                             compute_dtype=compute_dtype, proj_block=proj_block)

    def split_heads(t):   # bf16 glue: 'b n (h d) -> b h n d'
        return t.reshape(B, N, heads, dim_head).transpose(0, 2, 1, 3)

    o4 = _attention_call(split_heads(q), split_heads(k), split_heads(v),
                         compute_dtype=compute_dtype, seq_block=seq_block)
    o2 = o4.transpose(0, 2, 1, 3).reshape(B * N, inner)   # 'b h n d -> (b n) (h d)'

    y2 = _out_ffn_norm_call(o2, x.reshape(B * N, D), p,
                            scale_residual=scale_residual,
                            compute_dtype=compute_dtype,
                            row_block=row_block, ff_block=ff_block)
    return y2.reshape(B, N, D)


def transformer_forward(x, layers, *, heads, dim_head, scale_residual=1.0,
                        compute_dtype=jnp.bfloat16, seq_block=None,
                        proj_block=None, row_block=None, ff_block=None):
    B, N, _ = x.shape
    ffi = layers[0]["w2"].shape[0]
    if seq_block is None:
        seq_block = _pick_tile(N, 256)
    if proj_block is None:
        proj_block = _pick_tile(N, 256)
    if row_block is None:
        row_block = _pick_tile(B * N, 256)
    if ff_block is None:
        ff_block = _pick_tile(ffi, 512)
    assert N % seq_block == 0 and N % proj_block == 0
    assert (B * N) % row_block == 0 and ffi % ff_block == 0

    cos, sin = rotary_cos_sin(N, dim_head)
    cos_full = jnp.tile(cos, (1, heads))       # (N, heads*dim_head)
    sin_full = jnp.tile(sin, (1, heads))
    for p in layers:
        x = transformer_layer(x, p, cos_full, sin_full, heads=heads,
                              dim_head=dim_head, scale_residual=scale_residual,
                              compute_dtype=compute_dtype, seq_block=seq_block,
                              proj_block=proj_block, row_block=row_block,
                              ff_block=ff_block)
    return x


# ----------------------------- params / glue ----------------------------------


def rotary_cos_sin(n, dim_head):
    inv_freq = 1.0 / (10000.0 ** (jnp.arange(0, dim_head, 2, dtype=jnp.float32)
                                  / dim_head))
    seq = jnp.arange(n, dtype=jnp.float32)
    freqs = seq[:, None] * inv_freq[None, :]
    pos = jnp.concatenate([freqs, freqs], axis=-1)            # (n, dim_head)
    return jnp.cos(pos), jnp.sin(pos)


def _rotate_half_matrix(d):
    # t @ R == rotate_half(t) == cat(-t[:, d/2:], t[:, :d/2])
    h = d // 2
    eye = jnp.eye(h, dtype=jnp.float32)
    zero = jnp.zeros((h, h), jnp.float32)
    top = jnp.concatenate([zero, eye], axis=1)
    bot = jnp.concatenate([-eye, zero], axis=1)
    return jnp.concatenate([top, bot], axis=0)


def prepare_params(raw_layers, *, heads, dim_head, compute_dtype=jnp.bfloat16):
    """Exact re-parameterization of the torch module for the kernels:
    - 1/sqrt(d) scale folded into wq/bq,
    - rotate_half folded into pre-rotated weight copies (W @ R, a +-1 column
      permutation, hence numerically exact),
    - all weight matrices pre-cast to compute_dtype ONCE (biases stay f32)."""
    scale = dim_head ** -0.5
    R = jnp.kron(jnp.eye(heads, dtype=jnp.float32), _rotate_half_matrix(dim_head))
    cd = compute_dtype
    out = []
    for p in raw_layers:
        wq_s, bq_s = p["wq"] * scale, p["bq"] * scale
        out.append(dict(
            wq=wq_s.astype(cd),            bq=bq_s,
            wq_r=(wq_s @ R).astype(cd),    bq_r=bq_s @ R,
            wk=p["wk"].astype(cd),         bk=p["bk"],
            wk_r=(p["wk"] @ R).astype(cd), bk_r=p["bk"] @ R,
            wv=p["wv"].astype(cd),         bv=p["bv"],
            wo=p["wo"].astype(cd),         bo=p["bo"],
            w_in=p["w_in"].astype(cd),     b_in=p["b_in"],
            w_gate=p["w_gate"].astype(cd), b_gate=p["b_gate"],
            w2=p["w2"].astype(cd),         b2=p["b2"],
            lnw=p["lnw"], lnb=p["lnb"]))
    return out


def init_params(key, dim, depth, heads, dim_head, ff_mult):
    inner = heads * dim_head
    ffi = int(dim * ff_mult)
    layers = []
    for l in range(depth):
        ks = jax.random.split(jax.random.fold_in(key, l), 14)

        def nrm(kk, shape, s=0.05):
            return jax.random.normal(kk, shape, jnp.float32) * s

        # GEGLU weight stored pre-split (w_in = value half, w_gate = gate half);
        # mathematically identical to torch's fused Linear(dim, 2*ffi) + chunk.
        layers.append(dict(
            wq=nrm(ks[0], (dim, inner)),    bq=nrm(ks[1], (1, inner), 0.01),
            wk=nrm(ks[2], (dim, inner)),    bk=nrm(ks[3], (1, inner), 0.01),
            wv=nrm(ks[4], (dim, inner)),    bv=nrm(ks[5], (1, inner), 0.01),
            wo=nrm(ks[6], (inner, dim)),    bo=nrm(ks[7], (1, dim), 0.01),
            w_in=nrm(ks[8], (dim, ffi)),    b_in=nrm(ks[9], (1, ffi), 0.01),
            w_gate=nrm(ks[10], (dim, ffi)), b_gate=nrm(ks[11], (1, ffi), 0.01),
            w2=nrm(ks[12], (ffi, dim)),     b2=nrm(ks[13], (1, dim), 0.01),
            lnw=jnp.ones((1, dim), jnp.float32),
            lnb=jnp.zeros((1, dim), jnp.float32),
        ))
    return layers


# ----------------------------- pure-JAX reference ------------------------------
# Mirrors the kernel's mixed precision (bf16 MXU operands / activations, f32
# accumulation) using the same prepared (exactly re-parameterized) weights.


def _ref_layer(x, p, cos_full, sin_full, *, heads, dim_head, scale_residual,
               compute_dtype):
    B, N, D = x.shape
    cd = compute_dtype

    def mm(a, b):
        return jnp.dot(a.astype(cd), b.astype(cd), preferred_element_type=jnp.float32)

    q = (mm(x, p["wq"]) + p["bq"]) * cos_full + (mm(x, p["wq_r"]) + p["bq_r"]) * sin_full
    k = (mm(x, p["wk"]) + p["bk"]) * cos_full + (mm(x, p["wk_r"]) + p["bk_r"]) * sin_full
    v = mm(x, p["wv"]) + p["bv"]

    def split(t):
        return t.astype(cd).reshape(B, N, heads, dim_head).transpose(0, 2, 1, 3)

    q, k, v = split(q), split(k), split(v)
    sim = jnp.einsum('bhid,bhjd->bhij', q, k, preferred_element_type=jnp.float32)
    causal = jnp.triu(jnp.ones((N, N), bool), 1)
    sim = jnp.where(causal, -jnp.finfo(jnp.float32).max, sim)
    attn = jax.nn.softmax(sim, axis=-1)
    o = jnp.einsum('bhij,bhjd->bhid', attn.astype(cd), v,
                   preferred_element_type=jnp.float32)
    o = o.astype(cd).transpose(0, 2, 1, 3).reshape(B, N, heads * dim_head)
    attn_out = mm(o, p["wo"]) + p["bo"]

    h_in = mm(x, p["w_in"]) + p["b_in"]
    h_gate = mm(x, p["w_gate"]) + p["b_gate"]
    ff = h_in * jax.nn.gelu(h_gate, approximate=False)
    ffn_out = mm(ff, p["w2"]) + p["b2"]

    y = ffn_out + attn_out + x * scale_residual
    mean = jnp.mean(y, -1, keepdims=True)
    var = jnp.mean((y - mean) ** 2, -1, keepdims=True)
    return (y - mean) / jnp.sqrt(var + 1e-5) * p["lnw"] + p["lnb"]


def reference_forward(x, layers, *, heads, dim_head, scale_residual=1.0,
                      compute_dtype=jnp.bfloat16):
    N = x.shape[1]
    cos, sin = rotary_cos_sin(N, dim_head)
    cos_full = jnp.tile(cos, (1, heads))
    sin_full = jnp.tile(sin, (1, heads))
    for p in layers:
        x = _ref_layer(x, p, cos_full, sin_full, heads=heads, dim_head=dim_head,
                       scale_residual=scale_residual, compute_dtype=compute_dtype)
    return x


# ----------------------------- main -------------------------------------------

if __name__ == "__main__":
    dim, depth, heads, dim_head, ff_mult = 64, 2, 4, 16, 4
    B, N = 2, 32

    key = jax.random.PRNGKey(0)
    kx, kp = jax.random.split(key)
    x = jax.random.normal(kx, (B, N, dim), jnp.float32)
    raw_layers = init_params(kp, dim, depth, heads, dim_head, ff_mult)
    layers = prepare_params(raw_layers, heads=heads, dim_head=dim_head,
                            compute_dtype=jnp.bfloat16)

    # small blocks so the toy run exercises multiple grid steps, the online
    # softmax accumulation, the causal diagonal-tile masking / kv-DMA clamp and
    # the ffi-chunked FFN reduction
    out = transformer_forward(x, layers, heads=heads, dim_head=dim_head,
                              scale_residual=1.0, compute_dtype=jnp.bfloat16,
                              seq_block=16, proj_block=16, row_block=16,
                              ff_block=128)
    out = jax.block_until_ready(out)

    ref = reference_forward(x, layers, heads=heads, dim_head=dim_head,
                            scale_residual=1.0, compute_dtype=jnp.bfloat16)
    assert out.shape == (B, N, dim)
    max_err = float(jnp.max(jnp.abs(out - ref)))
    assert jnp.allclose(out, ref, rtol=2e-2, atol=2e-2), (
        f"mismatch vs pure-JAX reference (max abs err {max_err})")

    print("KERNEL_OK")
</pallas_src>

<mosaic_0001>
module attributes {stable_mosaic.version = 11 : i64} {
  func.func @_qkv_rope_kernel(%arg0: i32, %arg1: i32, %arg2: memref<1x16x64xf32, #tpu.memory_space<vmem>>, %arg3: memref<16x64xf32, #tpu.memory_space<vmem>>, %arg4: memref<16x64xf32, #tpu.memory_space<vmem>>, %arg5: memref<64x64xbf16, #tpu.memory_space<vmem>>, %arg6: memref<1x64xf32, #tpu.memory_space<vmem>>, %arg7: memref<64x64xbf16, #tpu.memory_space<vmem>>, %arg8: memref<1x64xf32, #tpu.memory_space<vmem>>, %arg9: memref<64x64xbf16, #tpu.memory_space<vmem>>, %arg10: memref<1x64xf32, #tpu.memory_space<vmem>>, %arg11: memref<64x64xbf16, #tpu.memory_space<vmem>>, %arg12: memref<1x64xf32, #tpu.memory_space<vmem>>, %arg13: memref<64x64xbf16, #tpu.memory_space<vmem>>, %arg14: memref<1x64xf32, #tpu.memory_space<vmem>>, %arg15: memref<1x16x64xbf16, #tpu.memory_space<vmem>>, %arg16: memref<1x16x64xbf16, #tpu.memory_space<vmem>>, %arg17: memref<1x16x64xbf16, #tpu.memory_space<vmem>>) attributes {dimension_semantics = [#tpu.dimension_semantics<parallel>, #tpu.dimension_semantics<parallel>], iteration_bounds = array<i64: 2, 2>, scalar_prefetch = 0 : i64, scratch_operands = 0 : i64, tpu.core_type = #tpu.core_type<tc>, window_params = [{transform_indices = @transform_0, window_bounds = array<i64: 1, 16, 64>}, {transform_indices = @transform_1, window_bounds = array<i64: 16, 64>}, {transform_indices = @transform_2, window_bounds = array<i64: 16, 64>}, {pipeline_mode = #tpu.pipeline_mode<synchronous>, transform_indices = @transform_3, window_bounds = array<i64: 64, 64>}, {pipeline_mode = #tpu.pipeline_mode<synchronous>, transform_indices = @transform_4, window_bounds = array<i64: 1, 64>}, {pipeline_mode = #tpu.pipeline_mode<synchronous>, transform_indices = @transform_5, window_bounds = array<i64: 64, 64>}, {pipeline_mode = #tpu.pipeline_mode<synchronous>, transform_indices = @transform_6, window_bounds = array<i64: 1, 64>}, {pipeline_mode = #tpu.pipeline_mode<synchronous>, transform_indices = @transform_7, window_bounds = array<i64: 64, 64>}, {pipeline_mode = #tpu.pipeline_mode<synchronous>, transform_indices = @transform_8, window_bounds = array<i64: 1, 64>}, {pipeline_mode = #tpu.pipeline_mode<synchronous>, transform_indices = @transform_9, window_bounds = array<i64: 64, 64>}, {pipeline_mode = #tpu.pipeline_mode<synchronous>, transform_indices = @transform_10, window_bounds = array<i64: 1, 64>}, {pipeline_mode = #tpu.pipeline_mode<synchronous>, transform_indices = @transform_11, window_bounds = array<i64: 64, 64>}, {pipeline_mode = #tpu.pipeline_mode<synchronous>, transform_indices = @transform_12, window_bounds = array<i64: 1, 64>}, {transform_indices = @transform_13, window_bounds = array<i64: 1, 16, 64>}, {transform_indices = @transform_14, window_bounds = array<i64: 1, 16, 64>}, {transform_indices = @transform_15, window_bounds = array<i64: 1, 16, 64>}]} {
    %c0 = arith.constant 0 : index
    %c0_0 = arith.constant 0 : index
    %c0_1 = arith.constant 0 : index
    %0 = vector.load %arg2[%c0, %c0_0, %c0_1] : memref<1x16x64xf32, #tpu.memory_space<vmem>>, vector<1x16x64xf32>
    %1 = vector.shape_cast %0 : vector<1x16x64xf32> to vector<16x64xf32>
    %2 = arith.truncf %1 : vector<16x64xf32> to vector<16x64xbf16>
    %c0_2 = arith.constant 0 : index
    %c0_3 = arith.constant 0 : index
    %3 = vector.load %arg3[%c0_2, %c0_3] : memref<16x64xf32, #tpu.memory_space<vmem>>, vector<16x64xf32>
    %c0_4 = arith.constant 0 : index
    %c0_5 = arith.constant 0 : index
    %4 = vector.load %arg4[%c0_4, %c0_5] : memref<16x64xf32, #tpu.memory_space<vmem>>, vector<16x64xf32>
    %c0_6 = arith.constant 0 : index
    %c0_7 = arith.constant 0 : index
    %5 = vector.load %arg5[%c0_6, %c0_7] : memref<64x64xbf16, #tpu.memory_space<vmem>>, vector<64x64xbf16>
    %cst = arith.constant dense<0.000000e+00> : vector<16x64xf32>
    %6 = tpu.matmul %2, %5, %cst {dimension_numbers = #tpu.dot_dimension_numbers<[1], [0], [0], [1], [0, 0, 1, 1], [], []>} : vector<16x64xbf16>, vector<64x64xbf16>, vector<16x64xf32> -> vector<16x64xf32>
    %c0_8 = arith.constant 0 : index
    %c0_9 = arith.constant 0 : index
    %7 = vector.load %arg6[%c0_8, %c0_9] : memref<1x64xf32, #tpu.memory_space<vmem>>, vector<1x64xf32>
    %8 = vector.broadcast %7 : vector<1x64xf32> to vector<16x64xf32>
    %9 = arith.addf %6, %8 : vector<16x64xf32>
    %10 = arith.mulf %9, %3 : vector<16x64xf32>
    %c0_10 = arith.constant 0 : index
    %c0_11 = arith.constant 0 : index
    %11 = vector.load %arg7[%c0_10, %c0_11] : memref<64x64xbf16, #tpu.memory_space<vmem>>, vector<64x64xbf16>
    %cst_12 = arith.constant dense<0.000000e+00> : vector<16x64xf32>
    %12 = tpu.matmul %2, %11, %cst_12 {dimension_numbers = #tpu.dot_dimension_numbers<[1], [0], [0], [1], [0, 0, 1, 1], [], []>} : vector<16x64xbf16>, vector<64x64xbf16>, vector<16x64xf32> -> vector<16x64xf32>
    %c0_13 = arith.constant 0 : index
    %c0_14 = arith.constant 0 : index
    %13 = vector.load %arg8[%c0_13, %c0_14] : memref<1x64xf32, #tpu.memory_space<vmem>>, vector<1x64xf32>
    %14 = vector.broadcast %13 : vector<1x64xf32> to vector<16x64xf32>
    %15 = arith.addf %12, %14 : vector<16x64xf32>
    %16 = arith.mulf %15, %4 : vector<16x64xf32>
    %17 = arith.addf %10, %16 : vector<16x64xf32>
    %c0_15 = arith.constant 0 : index
    %c0_16 = arith.constant 0 : index
    %18 = vector.load %arg9[%c0_15, %c0_16] : memref<64x64xbf16, #tpu.memory_space<vmem>>, vector<64x64xbf16>
    %cst_17 = arith.constant dense<0.000000e+00> : vector<16x64xf32>
    %19 = tpu.matmul %2, %18, %cst_17 {dimension_numbers = #tpu.dot_dimension_numbers<[1], [0], [0], [1], [0, 0, 1, 1], [], []>} : vector<16x64xbf16>, vector<64x64xbf16>, vector<16x64xf32> -> vector<16x64xf32>
    %c0_18 = arith.constant 0 : index
    %c0_19 = arith.constant 0 : index
    %20 = vector.load %arg10[%c0_18, %c0_19] : memref<1x64xf32, #tpu.memory_space<vmem>>, vector<1x64xf32>
    %21 = vector.broadcast %20 : vector<1x64xf32> to vector<16x64xf32>
    %22 = arith.addf %19, %21 : vector<16x64xf32>
    %23 = arith.mulf %22, %3 : vector<16x64xf32>
    %c0_20 = arith.constant 0 : index
    %c0_21 = arith.constant 0 : index
    %24 = vector.load %arg11[%c0_20, %c0_21] : memref<64x64xbf16, #tpu.memory_space<vmem>>, vector<64x64xbf16>
    %cst_22 = arith.constant dense<0.000000e+00> : vector<16x64xf32>
    %25 = tpu.matmul %2, %24, %cst_22 {dimension_numbers = #tpu.dot_dimension_numbers<[1], [0], [0], [1], [0, 0, 1, 1], [], []>} : vector<16x64xbf16>, vector<64x64xbf16>, vector<16x64xf32> -> vector<16x64xf32>
    %c0_23 = arith.constant 0 : index
    %c0_24 = arith.constant 0 : index
    %26 = vector.load %arg12[%c0_23, %c0_24] : memref<1x64xf32, #tpu.memory_space<vmem>>, vector<1x64xf32>
    %27 = vector.broadcast %26 : vector<1x64xf32> to vector<16x64xf32>
    %28 = arith.addf %25, %27 : vector<16x64xf32>
    %29 = arith.mulf %28, %4 : vector<16x64xf32>
    %30 = arith.addf %23, %29 : vector<16x64xf32>
    %c0_25 = arith.constant 0 : index
    %c0_26 = arith.constant 0 : index
    %31 = vector.load %arg13[%c0_25, %c0_26] : memref<64x64xbf16, #tpu.memory_space<vmem>>, vector<64x64xbf16>
    %cst_27 = arith.constant dense<0.000000e+00> : vector<16x64xf32>
    %32 = tpu.matmul %2, %31, %cst_27 {dimension_numbers = #tpu.dot_dimension_numbers<[1], [0], [0], [1], [0, 0, 1, 1], [], []>} : vector<16x64xbf16>, vector<64x64xbf16>, vector<16x64xf32> -> vector<16x64xf32>
    %c0_28 = arith.constant 0 : index
    %c0_29 = arith.constant 0 : index
    %33 = vector.load %arg14[%c0_28, %c0_29] : memref<1x64xf32, #tpu.memory_space<vmem>>, vector<1x64xf32>
    %34 = vector.broadcast %33 : vector<1x64xf32> to vector<16x64xf32>
    %35 = arith.addf %32, %34 : vector<16x64xf32>
    %36 = arith.truncf %17 : vector<16x64xf32> to vector<16x64xbf16>
    %c0_30 = arith.constant 0 : index
    %c0_31 = arith.constant 0 : index
    %c0_32 = arith.constant 0 : index
    %37 = vector.load %arg15[%c0_30, %c0_31, %c0_32] : memref<1x16x64xbf16, #tpu.memory_space<vmem>>, vector<1x16x64xbf16>
    %38 = vector.shape_cast %37 : vector<1x16x64xbf16> to vector<16x64xbf16>
    %39 = vector.shape_cast %36 : vector<16x64xbf16> to vector<1x16x64xbf16>
    tpu.vector_store %arg15[%c0_30, %c0_31, %c0_32], %39 {strides = array<i32>} : memref<1x16x64xbf16, #tpu.memory_space<vmem>>, vector<1x16x64xbf16>,
    %40 = arith.truncf %30 : vector<16x64xf32> to vector<16x64xbf16>
    %c0_33 = arith.constant 0 : index
    %c0_34 = arith.constant 0 : index
    %c0_35 = arith.constant 0 : index
    %41 = vector.load %arg16[%c0_33, %c0_34, %c0_35] : memref<1x16x64xbf16, #tpu.memory_space<vmem>>, vector<1x16x64xbf16>
    %42 = vector.shape_cast %41 : vector<1x16x64xbf16> to vector<16x64xbf16>
    %43 = vector.shape_cast %40 : vector<16x64xbf16> to vector<1x16x64xbf16>
    tpu.vector_store %arg16[%c0_33, %c0_34, %c0_35], %43 {strides = array<i32>} : memref<1x16x64xbf16, #tpu.memory_space<vmem>>, vector<1x16x64xbf16>,
    %44 = arith.truncf %35 : vector<16x64xf32> to vector<16x64xbf16>
    %c0_36 = arith.constant 0 : index
    %c0_37 = arith.constant 0 : index
    %c0_38 = arith.constant 0 : index
    %45 = vector.load %arg17[%c0_36, %c0_37, %c0_38] : memref<1x16x64xbf16, #tpu.memory_space<vmem>>, vector<1x16x64xbf16>
    %46 = vector.shape_cast %45 : vector<1x16x64xbf16> to vector<16x64xbf16>
    %47 = vector.shape_cast %44 : vector<16x64xbf16> to vector<1x16x64xbf16>
    tpu.vector_store %arg17[%c0_36, %c0_37, %c0_38], %47 {strides = array<i32>} : memref<1x16x64xbf16, #tpu.memory_space<vmem>>, vector<1x16x64xbf16>,
    return
  }
  func.func @transform_0(%arg0: i32, %arg1: i32) -> (i32, i32, i32) {
    %c0_i32 = arith.constant 0 : i32
    %c0_i32_0 = arith.constant 0 : i32
    return %arg0, %arg1, %c0_i32 : i32, i32, i32
  }
  func.func @transform_1(%arg0: i32, %arg1: i32) -> (i32, i32) {
    %c0_i32 = arith.constant 0 : i32
    %c0_i32_0 = arith.constant 0 : i32
    return %arg1, %c0_i32 : i32, i32
  }
  func.func @transform_2(%arg0: i32, %arg1: i32) -> (i32, i32) {
    %c0_i32 = arith.constant 0 : i32
    %c0_i32_0 = arith.constant 0 : i32
    return %arg1, %c0_i32 : i32, i32
  }
  func.func @transform_3(%arg0: i32, %arg1: i32) -> (i32, i32) {
    %c0_i32 = arith.constant 0 : i32
    %c0_i32_0 = arith.constant 0 : i32
    %c0_i32_1 = arith.constant 0 : i32
    return %c0_i32, %c0_i32_0 : i32, i32
  }
  func.func @transform_4(%arg0: i32, %arg1: i32) -> (i32, i32) {
    %c0_i32 = arith.constant 0 : i32
    %c0_i32_0 = arith.constant 0 : i32
    %c0_i32_1 = arith.constant 0 : i32
    return %c0_i32, %c0_i32_0 : i32, i32
  }
  func.func @transform_5(%arg0: i32, %arg1: i32) -> (i32, i32) {
    %c0_i32 = arith.constant 0 : i32
    %c0_i32_0 = arith.constant 0 : i32
    %c0_i32_1 = arith.constant 0 : i32
    return %c0_i32, %c0_i32_0 : i32, i32
  }
  func.func @transform_6(%arg0: i32, %arg1: i32) -> (i32, i32) {
    %c0_i32 = arith.constant 0 : i32
    %c0_i32_0 = arith.constant 0 : i32
    %c0_i32_1 = arith.constant 0 : i32
    return %c0_i32, %c0_i32_0 : i32, i32
  }
  func.func @transform_7(%arg0: i32, %arg1: i32) -> (i32, i32) {
    %c0_i32 = arith.constant 0 : i32
    %c0_i32_0 = arith.constant 0 : i32
    %c0_i32_1 = arith.constant 0 : i32
    return %c0_i32, %c0_i32_0 : i32, i32
  }
  func.func @transform_8(%arg0: i32, %arg1: i32) -> (i32, i32) {
    %c0_i32 = arith.constant 0 : i32
    %c0_i32_0 = arith.constant 0 : i32
    %c0_i32_1 = arith.constant 0 : i32
    return %c0_i32, %c0_i32_0 : i32, i32
  }
  func.func @transform_9(%arg0: i32, %arg1: i32) -> (i32, i32) {
    %c0_i32 = arith.constant 0 : i32
    %c0_i32_0 = arith.constant 0 : i32
    %c0_i32_1 = arith.constant 0 : i32
    return %c0_i32, %c0_i32_0 : i32, i32
  }
  func.func @transform_10(%arg0: i32, %arg1: i32) -> (i32, i32) {
    %c0_i32 = arith.constant 0 : i32
    %c0_i32_0 = arith.constant 0 : i32
    %c0_i32_1 = arith.constant 0 : i32
    return %c0_i32, %c0_i32_0 : i32, i32
  }
  func.func @transform_11(%arg0: i32, %arg1: i32) -> (i32, i32) {
    %c0_i32 = arith.constant 0 : i32
    %c0_i32_0 = arith.constant 0 : i32
    %c0_i32_1 = arith.constant 0 : i32
    return %c0_i32, %c0_i32_0 : i32, i32
  }
  func.func @transform_12(%arg0: i32, %arg1: i32) -> (i32, i32) {
    %c0_i32 = arith.constant 0 : i32
    %c0_i32_0 = arith.constant 0 : i32
    %c0_i32_1 = arith.constant 0 : i32
    return %c0_i32, %c0_i32_0 : i32, i32
  }
  func.func @transform_13(%arg0: i32, %arg1: i32) -> (i32, i32, i32) {
    %c0_i32 = arith.constant 0 : i32
    %c0_i32_0 = arith.constant 0 : i32
    return %arg0, %arg1, %c0_i32 : i32, i32, i32
  }
  func.func @transform_14(%arg0: i32, %arg1: i32) -> (i32, i32, i32) {
    %c0_i32 = arith.constant 0 : i32
    %c0_i32_0 = arith.constant 0 : i32
    return %arg0, %arg1, %c0_i32 : i32, i32, i32
  }
  func.func @transform_15(%arg0: i32, %arg1: i32) -> (i32, i32, i32) {
    %c0_i32 = arith.constant 0 : i32
    %c0_i32_0 = arith.constant 0 : i32
    return %arg0, %arg1, %c0_i32 : i32, i32, i32
  }
}

</mosaic_0001>

<bundles_post_ra>
// kernel: tpu_custom_call.1
= control target key start
LH: loop header
LB: loop body
LE: loop exit
PB: predicated region body
PF: predicated region fallthrough
CT: control target
= control target key end

     0   :  { %s2918_s0 = inlined_call_operand.hbm [shape: f32[2,32,64], index: 0, kind: input, shape index: {}]   ;;  %s2919_s1 = inlined_call_operand.hbm [shape: f32[32,64], index: 1, kind: input, shape index: {}]   ;;  %s2920_s2 = inlined_call_operand.hbm [shape: f32[32,64], index: 2, kind: input, shape index: {}]   ;;  %s2921_s3 = inlined_call_operand.hbm [shape: bf16[64,64], index: 3, kind: input, shape index: {}]   ;;  %s2922_s4 = inlined_call_operand.vmem [shape: f32[1,64], index: 4, kind: input, shape index: {}]   ;;  %s2923_s5 = inlined_call_operand.hbm [shape: bf16[64,64], index: 5, kind: input, shape index: {}]   ;;  %s2924_s6 = inlined_call_operand.vmem [shape: f32[1,64], index: 6, kind: input, shape index: {}]   ;;  %s2925_s7 = inlined_call_operand.hbm [shape: bf16[64,64], index: 7, kind: input, shape index: {}]   ;;  %s2926_s8 = inlined_call_operand.vmem [shape: f32[1,64], index: 8, kind: input, shape index: {}]   ;;  %s2927_s9 = inlined_call_operand.hbm [shape: bf16[64,64], index: 9, kind: input, shape index: {}]   ;;  %s2928_s10 = inlined_call_operand.vmem [shape: f32[1,64], index: 10, kind: input, shape index: {}]   ;;  %s2929_s11 = inlined_call_operand.hbm [shape: bf16[64,64], index: 11, kind: input, shape index: {}]   ;;  %s2930_s12 = inlined_call_operand.vmem [shape: f32[1,64], index: 12, kind: input, shape index: {}]   ;;  %s2931_s13 = inlined_call_operand.hbm [shape: bf16[2,32,64], index: 13, kind: output, shape index: {0}]   ;;  %s2932_s14 = inlined_call_operand.hbm [shape: bf16[2,32,64], index: 14, kind: output, shape index: {1}]   ;;  %s2933_s15 = inlined_call_operand.hbm [shape: bf16[2,32,64], index: 15, kind: output, shape index: {2}]  }
   0x1   :  { %2957 = sst [smem:[#allocation35_spill]] %s2918_s0 }
   0x2   :  { %2958 = sst [smem:[#allocation36_spill]] %s2919_s1 }
   0x3   :  { %2959 = sst [smem:[#allocation37_spill]] %s2920_s2 }
   0x4   :  { %2960 = sst [smem:[#allocation38_spill]] %s2921_s3 }
   0x5   :  { %2961 = sst [smem:[#allocation39_spill]] %s2922_s4 }
   0x6   :  { %2962 = sst [smem:[#allocation40_spill]] %s2923_s5 }
   0x7   :  { %2963 = sst [smem:[#allocation41_spill]] %s2924_s6 }
   0x8   :  { %2964 = sst [smem:[#allocation42_spill]] %s2925_s7 }
   0x9   :  { %2965 = sst [smem:[#allocation43_spill]] %s2926_s8 }
   0xa   :  { %2966 = sst [smem:[#allocation44_spill]] %s2927_s9 }
   0xb   :  { %2967 = sst [smem:[#allocation45_spill]] %s2928_s10 }
   0xc   :  { %2968 = sst [smem:[#allocation46_spill]] %s2929_s11 }
   0xd   :  { %2969 = sst [smem:[#allocation47_spill]] %s2930_s12 }
   0xe   :  { %2970 = sst [smem:[#allocation48_spill]] %s2931_s13 }
   0xf   :  { %2971 = sst [smem:[#allocation49_spill]] %s2932_s14 }
  0x10   :  { %2972 = sst [smem:[#allocation50_spill]] %s2933_s15 }
  0x11   :  { %21 = vsyncpa [#allocation3], 0 }
  0x12   :  { %23 = vsyncpa [#allocation3 + $0x1], 0 }
  0x13   :  { %24 = vsyncpa [#allocation6], 0 }
  0x14   :  { %26 = vsyncpa [#allocation6 + $0x1], 0 }
  0x15   :  { %27 = vsyncpa [#allocation9], 0 }
  0x16   :  { %28 = vsyncpa [#allocation12], 0 }
  0x17   :  { %29 = vsyncpa [#allocation15], 0 }
  0x18   :  { %30 = vsyncpa [#allocation4], 0 }
  0x19   :  { %32 = vsyncpa [#allocation4 + $0x1], 0 }
  0x1a   :  { %33 = vsyncpa [#allocation18], 0 }
  0x1b   :  { %35 = vsyncpa [#allocation18 + $0x1], 0  ;;  %s2356_s18 = smov 0   ;;  %s2358_s19 = smov 0  }
  0x1c   :  { %s2360_s20 = smov 0   ;;  %s2362_s21 = smov 0  }
  0x1d   :  { %s2364_s22 = smov 0   ;;  %s2366_s23 = smov 0  }
  0x1e   :  { %s2368_s24 = smov 0   ;;  %s2370_s25 = smov 0  }
  0x1f   :  { %s2372_s26 = smov 0   ;;  %s2374_s27 = smov 0  }
  0x20   :  { %s2376_s28 = smov 0  }
  0x21 LB: > { %2973 = sst [smem:[#allocation27_spill]] %s2219_s19  ;;  %s2412_s29 = sadd.s32 4294967295, %s2255_s28   ;;  %s2255_s28 = sphi %s2376_s28, %s41_s28   ;;  %s2251_s27 = sphi %s2374_s27, %s3042_s27   ;;  %s2247_s26 = sphi %s2372_s26, %s3041_s26   ;;  %s2243_s25 = sphi %s2370_s25, %s3040_s25   ;;  %s2239_s24 = sphi %s2368_s24, %s3039_s24   ;;  %s2235_s23 = sphi %s2366_s23, %s3038_s23   ;;  %s2231_s22 = sphi %s2364_s22, %s3037_s22   ;;  %s2227_s21 = sphi %s2362_s21, %s3036_s21   ;;  %s2223_s20 = sphi %s2360_s20, %s3033_s20   ;;  %s2219_s19 = sphi %s2358_s19, %s3032_s19   ;;  %s2215_s18 = sphi %s2356_s18, %s3031_s18  }
  0x22   : > { %2974 = sst [smem:[#allocation28_spill]] %s2223_s20  ;;  %p1476_p0 = scmp.ge.s32.totalorder %s2255_s28, 1 }
  0x23   : > { %2975 = sst [smem:[#allocation29_spill]] %s2239_s24  ;;  %p2946_p1 = scmp.eq.s32.totalorder %s2412_s29, 0 }
  0x24   : > { %2976 = sst [smem:[#allocation30_spill]] %s2243_s25  ;;  %p432_p2 = scmp.lt.s32.totalorder %s2255_s28, 5 }
  0x25   : > { %s2257_s16 = smov [#allocation8]   ;;  %s2258_s12 = smov [#allocation11]  }
  0x26   : > { %p2417_p3 = pnand %p1476_p0, %p432_p2  ;;  %s444_s17 = sshll.u32 %s2257_s16, 4  ;;  %s445_s17 = int_to_ptr.vmem [resolvable:$true] %s444_s17 }
  0x27   : > { %s476_s14 = sshll.u32 %s2258_s12, 4  ;;  %s1860_s8 = scalar_lea.vmem %s445_s17, 512  ;;  %s477_s14 = int_to_ptr.vmem [resolvable:$true] %s476_s14 }
  0x28   : > { %s2977_s30 = scalar_select %p2417_p3, 1, 0 }
  0x29   : > { %p1680_p4 = pneg %p2417_p3  ;;  %p1861_p7 = scmp.ne.s32.totalorder %s445_s17, %s1860_s8 }
  0x2a   : > { %2978 = sst [smem:[#allocation31_spill]] %s2977_s30  ;;  %p1868_p10 = scmp.lt.s32.totalorder %s445_s17, %s445_s17 }
  0x2b   : > { %p2425_p5 = pnand %p1680_p4, %p2946_p1  ;;  %p1869_p11 = scmp.lt.s32.totalorder %s1860_s8, %s1860_s8 }
  0x2d   : > { %p2431_p6 = pneg %p2425_p5  ;;  %p1870_p12 = por %p1869_p11, %p1868_p10 }
  0x2f   : > { %p1863_p8 = pnand %p1861_p7, %p2431_p6 }
  0x31   : > { %p1864_p9 = pneg %p1863_p8 }
  0x33   : > { %p1871_p13 = pnand %p1870_p12, %p1864_p9 }
  0x35   : > { %1874 = shalt.err (!%p1871_p13)
}
  0x36   : > { %s2937_s16 = smov 64   ;;  %s2939_s12 = smov 4  }
  0x37   : > { %s2981_s3 = sld [smem:[#allocation38_spill]]  ;;  %s1886_s4 = scalar_lea.vmem %s477_s14, 512 }
  0x38   : > { %p1887_p0 = scmp.ne.s32.totalorder %s477_s14, %s1886_s4  ;;  %p1894_p7 = scmp.lt.s32.totalorder %s477_s14, %s477_s14 }
  0x39   : > { %p1895_p8 = scmp.lt.s32.totalorder %s1886_s4, %s1886_s4 }
  0x3a   : > { %p1889_p2 = pnand %p1887_p0, %p2431_p6 }
  0x3b   : > { %p1896_p9 = por %p1895_p8, %p1894_p7 }
  0x3c   : > { %p1890_p4 = pneg %p1889_p2 }
  0x3d   : > { %1683 = dma.hbm_to_vmem [thread:$0]  (!%p2425_p5), %s2981_s3, 512, %s445_s17, [#allocation9], %s2937_s16, %s2937_s16, %s2939_s12  }
  0x3e   : > { %p1897_p10 = pnand %p1896_p9, %p1890_p4 }
  0x40   : > { %1900 = shalt.err (!%p1897_p10)
}
  0x41   : > { %s2982_s7 = sld [smem:[#allocation42_spill]]  ;;  %s50_s4 = sadd.s32 1, %s2247_s26 }
  0x42   : > { %p2947_p11 = scmp.eq.s32.totalorder %s2255_s28, 0  ;;  %p2457_p12 = scmp.ge.s32.totalorder %s50_s4, 2 }
  0x43   : > { %s88_s13 = sadd.s32 1, %s2223_s20  ;;  %p95_p13 = scmp.ne.s32.totalorder %s2223_s20, %s2219_s19 }
  0x44   : > { %p101_p0 = scmp.ne.s32.totalorder %s2219_s19, %s2215_s18  ;;  %s3044_s4 = smov (%p2457_p12, %s50_s4), 0 }
  0x45   : > { %2984 = sst [smem:[#allocation32_spill]] %s3044_s4  ;;  %p2472_p2 = por %p95_p13, %p2947_p11 }
  0x46   : > { %p2478_p4 = por %p101_p0, %p2946_p1  ;;  %s2484_s17 = ssub.s32 %s2247_s26, %s3044_s4 }
  0x47   : > { %1689 = dma.hbm_to_vmem [thread:$0]  (!%p2425_p5), %s2982_s7, 512, %s477_s14, [#allocation12], %s2937_s16, %s2937_s16, %s2939_s12  }
  0x48   : > { %s2986_s14 = scalar_select %p2478_p4, 1, 0 }
  0x49   : > { %p2945_p7 = scmp.lt.s32.totalorder %s2255_s28, 4  ;;  %p86_p8 = scmp.eq.s32.totalorder %s2484_s17, 0 }
  0x4a   : > { %s548_s18 = sand.u32 1, %s2255_s28   ;;  %s550_s16 = sand.u32 1, %s2223_s20  }
  0x4b   : > { %s2490_s8 = scalar_select %p86_p8, %s2223_s20, %s88_s13  }
  0x4c   : > { %s2493_s12 = sshll.u32 %s550_s16, 4  ;;  %s1555_s3 = sshll.u32 %s2247_s26, 8 }
  0x4d   : > { %2987 = sst [smem:[#allocation33_spill]] %s2490_s8  ;;  %s552_s30 = scalar_lea.vmem [#allocation5], %s2493_s12 }
  0x4e   : > { %s2988_s1 = sld [smem:[#allocation36_spill]]  ;;  %s559_s0 = sshll.u32 %s552_s30, 4  ;;  %s560_s0 = int_to_ptr.vmem [resolvable:$true] %s559_s0 }
  0x4f   : > { %p2504_p9 = pnand %p2945_p7, %p2472_p2  ;;  %s2990_s2 = sld [smem:[#allocation37_spill]] }
  0x50   : > { %s2513_s20 = scalar_lea.sflag [#allocation6], %s548_s18  ;;  %s1914_s7 = scalar_lea.vmem %s560_s0, 256 }
  0x51   : > { %p2952_p10 = pneg %p2504_p9  ;;  %p1915_p13 = scmp.ne.s32.totalorder %s560_s0, %s1914_s7 }
  0x52   : > { %s2261_s24 = smov [#allocation5]  }
  0x53   : > { %p1917_p0 = pnand %p1915_p13, %p2952_p10  ;;  %s1919_s30 = sshll.u32 %s2261_s24, 4  ;;  %s1920_s30 = int_to_ptr.vmem [resolvable:$false] %s1919_s30 }
  0x54   : > { %s558_s19 = scalar_lea.hbm %s2988_s1, %s1555_s3  ;;  %s1921_s25 = scalar_lea.vmem %s1920_s30, 512 }
  0x55   : > { %s2511_s8 = scalar_lea.hbm %s2990_s2, %s1555_s3  ;;  %p1918_p2 = pneg %p1917_p0 }
  0x56   : > { %p1922_p8 = scmp.lt.s32.totalorder %s560_s0, %s1920_s30  ;;  %p1923_p7 = scmp.lt.s32.totalorder %s1921_s25, %s1914_s7 }
  0x58   : > { %p1924_p1 = por %p1923_p7, %p1922_p8 }
  0x5a   : > { %p1925_p11 = pnand %p1924_p1, %p1918_p2 }
  0x5c   : > { %1928 = shalt.err (!%p1925_p11)
}
  0x5d   : > { %s2948_s3 = smov 128   ;;  %s2950_s18 = smov 8  }
  0x5e   : > { %1702 = dma.hbm_to_vmem [thread:$0]  (!%p2504_p9), %s558_s19, 256, %s560_s0, %s2513_s20, %s2948_s3, %s2948_s3, %s2950_s18  }
  0x5f   : > { %s573_s13 = scalar_lea.vmem [#allocation7], %s2493_s12  ;;  %s2264_s24 = smov [#allocation10]  }
  0x60   : > { %s580_s16 = sshll.u32 %s573_s13, 4  ;;  %s460_s7 = sshll.u32 %s2264_s24, 4  ;;  %s2527_s16 = int_to_ptr.vmem [resolvable:$true] %s580_s16  ;;  %s461_s7 = int_to_ptr.vmem [resolvable:$true] %s460_s7 }
  0x61   : > { %s1940_s30 = scalar_lea.vmem %s461_s7, 512  ;;  %p1948_p13 = scmp.lt.s32.totalorder %s461_s7, %s461_s7 }
  0x62   : > { %p1941_p1 = scmp.ne.s32.totalorder %s461_s7, %s1940_s30  ;;  %p1949_p0 = scmp.lt.s32.totalorder %s1940_s30, %s1940_s30 }
  0x64   : > { %p1943_p11 = pnand %p1941_p1, %p2431_p6  ;;  %p1950_p2 = por %p1949_p0, %p1948_p13 }
  0x66   : > { %p1944_p7 = pneg %p1943_p11 }
  0x68   : > { %p1951_p8 = pnand %p1950_p2, %p1944_p7 }
  0x6a   : > { %1954 = shalt.err (!%p1951_p8)
}
  0x6b   : > { %s2991_s0 = smov 4   ;;  %s2992_s19 = smov 64  }
  0x6c   : > { %s2993_s5 = sld [smem:[#allocation40_spill]]  ;;  %s2265_s13 = smov [#allocation13]  }
  0x6d   : > { %s492_s24 = sshll.u32 %s2265_s13, 4  ;;  %s2266_s3 = smov [#allocation14]   ;;  %s493_s24 = int_to_ptr.vmem [resolvable:$true] %s492_s24 }
  0x6e   : > { %s508_s18 = sshll.u32 %s2266_s3, 4  ;;  %s1966_s1 = scalar_lea.vmem %s493_s24, 512  ;;  %s509_s18 = int_to_ptr.vmem [resolvable:$true] %s508_s18 }
  0x6f   : > { %p1967_p1 = scmp.ne.s32.totalorder %s493_s24, %s1966_s1  ;;  %p1974_p13 = scmp.lt.s32.totalorder %s493_s24, %s493_s24 }
  0x70   : > { %p1975_p0 = scmp.lt.s32.totalorder %s1966_s1, %s1966_s1 }
  0x71   : > { %p1969_p11 = pnand %p1967_p1, %p2431_p6 }
  0x72   : > { %1686 = dma.hbm_to_vmem [thread:$0]  (!%p2425_p5), %s2993_s5, 512, %s461_s7, [#allocation9], %s2992_s19, %s2992_s19, %s2991_s0  }
  0x73   : > { %p1970_p7 = pneg %p1969_p11  ;;  %p1976_p2 = por %p1975_p0, %p1974_p13 }
  0x75   : > { %p1977_p8 = pnand %p1976_p2, %p1970_p7 }
  0x77   : > { %1980 = shalt.err (!%p1977_p8)
}
  0x78   : > { %s2994_s9 = sld [smem:[#allocation44_spill]]  ;;  %s1992_s3 = scalar_lea.vmem %s509_s18, 512 }
  0x79   : > { %p1993_p10 = scmp.ne.s32.totalorder %s509_s18, %s1992_s3  ;;  %p2000_p4 = scmp.lt.s32.totalorder %s509_s18, %s509_s18 }
  0x7a   : > { %p2001_p13 = scmp.lt.s32.totalorder %s1992_s3, %s1992_s3 }
  0x7b   : > { %p1995_p1 = pnand %p1993_p10, %p2431_p6 }
  0x7c   : > { %p2002_p7 = por %p2001_p13, %p2000_p4 }
  0x7d   : > { %p1996_p11 = pneg %p1995_p1 }
  0x7e   : > { %1692 = dma.hbm_to_vmem [thread:$0]  (!%p2425_p5), %s2994_s9, 512, %s493_s24, [#allocation12], %s2992_s19, %s2992_s19, %s2991_s0  }
  0x7f   : > { %p2003_p0 = pnand %p2002_p7, %p1996_p11 }
  0x81   : > { %2006 = shalt.err (!%p2003_p0)
}
  0x82   : > { %s2995_s11 = sld [smem:[#allocation46_spill]]  ;;  %s2954_s10 = sadd.s32 4294967294, %s2255_s28  }
  0x83   : > { %s53_s15 = sadd.s32 1, %s2251_s27  ;;  %s62_s25 = sadd.s32 1, %s2235_s23 }
  0x84   : > { %s3046_s15 = smov (!%p2457_p12, %s53_s15), %s2251_s27  ;;  %p69_p6 = scmp.ne.s32.totalorder %s2235_s23, %s2231_s22 }
  0x85   : > { %p75_p4 = scmp.ne.s32.totalorder %s2231_s22, %s2227_s21  ;;  %p55_p10 = scmp.ge.s32.totalorder %s3046_s15, 2 }
  0x86   : > { %p363_p2 = scmp.eq.s32.totalorder %s2412_s29, 3  ;;  %p2996_p8 = scmp.eq.s32.totalorder %s2255_s28, 0 }
  0x87   : > { %s3048_s15 = smov (%p55_p10, %s3046_s15), 0  ;;  %p369_p13 = scmp.eq.s32.totalorder %s2954_s10, 3 }
  0x88   : > { %1695 = dma.hbm_to_vmem [thread:$0]  (!%p2425_p5), %s2995_s11, 512, %s509_s18, [#allocation15], %s2992_s19, %s2992_s19, %s2991_s0  }
  0x89   : > { %p2572_p1 = por %p2996_p8, %p69_p6  ;;  %p2998_p5 = scmp.eq.s32.totalorder %s2412_s29, 0 }
  0x8a   : > { %3000 = sst [smem:[#allocation34_spill]] %s3048_s15  ;;  %p2584_p12 = por %p363_p2, %p69_p6 }
  0x8b   : > { %p2578_p11 = por %p2998_p5, %p75_p4  ;;  %s57_s0 = ssub.s32 %s2251_s27, %s3048_s15 }
  0x8c   : > { %s3001_s6 = scalar_select %p2584_p12, 1, 0 }
  0x8d   : > { %s525_s19 = sand.u32 1, %s2235_s23   ;;  %s59_s24 = sor.u32 %s2484_s17, %s57_s0 }
  0x8e   : > { %p2594_p7 = por %p369_p13, %p75_p4  ;;  %p60_p0 = scmp.eq.s32.totalorder %s59_s24, 0 }
  0x8f   : > { %s1483_s30 = sshll.u32 %s525_s19, 4  ;;  %s1484_s3 = sshll.u32 %s2247_s26, 1 }
  0x90   : > { %s3002_s7 = scalar_select %p2594_p7, 1, 0 }
  0x91   : > { %s2602_s1 = scalar_select %p60_p0, %s2235_s23, %s62_s25  }
  0x92   : > { %s1485_s12 = sshll.u32 %s2251_s27, 2  ;;  %s529_s2 = scalar_lea.vmem [#allocation2], %s1483_s30 }
  0x93   : > { %s535_s10 = sadd.s32 %s1485_s12, %s1484_s3  ;;  %s538_s5 = sshll.u32 %s529_s2, 4  ;;  %s2605_s5 = int_to_ptr.vmem [resolvable:$true] %s538_s5 }
  0x94   : > { %s1486_s9 = sshll.u32 %s535_s10, 7  ;;  %s3003_s11 = sld [smem:[#allocation35_spill]] }
  0x95   : > { %p3004_p6 = scmp.lt.s32.totalorder %s2255_s28, 4  ;;  %s2020_s25 = scalar_lea.vmem %s2527_s16, 256 }
  0x96   : > { %p2021_p10 = scmp.ne.s32.totalorder %s2527_s16, %s2020_s25  ;;  %p3006_p2 = pneg %p2504_p9 }
  0x97   : > { %p2616_p4 = pnand %p3004_p6, %p2572_p1  ;;  %s2267_s2 = smov [#allocation7]  }
  0x98   : > { %p2023_p8 = pnand %p2021_p10, %p3006_p2  ;;  %s2025_s10 = sshll.u32 %s2267_s2, 4  ;;  %s2026_s10 = int_to_ptr.vmem [resolvable:$false] %s2025_s10 }
  0x99   : > { %s2027_s30 = scalar_lea.vmem %s2026_s10, 512  ;;  %p2028_p13 = scmp.lt.s32.totalorder %s2527_s16, %s2026_s10 }
  0x9a   : > { %s2610_s15 = scalar_lea.hbm %s3003_s11, %s1486_s9  ;;  %p2024_p5 = pneg %p2023_p8 }
  0x9b   : > { %p2029_p0 = scmp.lt.s32.totalorder %s2027_s30, %s2020_s25 }
  0x9d   : > { %p2030_p7 = por %p2029_p0, %p2028_p13 }
  0x9f   : > { %p2031_p12 = pnand %p2030_p7, %p2024_p5 }
  0xa1   : > { %2034 = shalt.err (!%p2031_p12)
}
  0xa2   : > { %s3007_s9 = smov 8   ;;  %s3008_s11 = smov 128  }
  0xa3   : > { %1705 = dma.hbm_to_vmem [thread:$0]  (!%p2504_p9), %s2511_s8, 256, %s2527_s16, %s2513_s20, %s3008_s11, %s3008_s11, %s3007_s9  }
  0xa4   : > { %s526_s13 = scalar_lea.sflag [#allocation3], %s525_s19  ;;  %p2037_p1 = pneg %p2616_p4 }
  0xa5   : > { %s2048_s3 = scalar_lea.vmem %s2605_s5, 256  ;;  %s2268_s4 = smov [#allocation2]  }
  0xa6   : > { %p2049_p12 = scmp.ne.s32.totalorder %s2605_s5, %s2048_s3  ;;  %s2053_s12 = sshll.u32 %s2268_s4, 4  ;;  %s2054_s12 = int_to_ptr.vmem [resolvable:$false] %s2053_s12 }
  0xa7   : > { %s2055_s17 = scalar_lea.vmem %s2054_s12, 512  ;;  %p2056_p10 = scmp.lt.s32.totalorder %s2605_s5, %s2054_s12 }
  0xa8   : > { %p2051_p7 = pnand %p2049_p12, %p2037_p1  ;;  %p2057_p2 = scmp.lt.s32.totalorder %s2055_s17, %s2048_s3 }
  0xaa   : > { %p2052_p6 = pneg %p2051_p7  ;;  %p2058_p8 = por %p2057_p2, %p2056_p10 }
  0xac   : > { %p2059_p5 = pnand %p2058_p8, %p2052_p6 }
  0xae   : > { %2062 = shalt.err (!%p2059_p5)
}
  0xaf   : > { %1699 = dma.hbm_to_vmem [thread:$0]  (!%p2616_p4), %s2610_s15, 256, %s2605_s5, %s526_s13, %s3008_s11, %s3008_s11, %s3007_s9  }
  0xb0   : > { %592 = sbr.rel (%p2417_p3) target bundleno = 486 (0x1e6), region = 72  ;;  %s2651_s8 = sand.u32 (!%p2417_p3), 1, %s2231_s22  }
  0xb1   : > { %s1494_s16 = sshll.u32 (!%p2417_p3), %s2651_s8, 4  ;;  %s595_s19 = scalar_lea.sflag (!%p2417_p3), [#allocation3], %s2651_s8 }
  0xb2   : > { %s2655_s0 = scalar_lea.vmem (!%p2417_p3), [#allocation2], %s1494_s16 }
  0xb5   : > { %2186 = dma.done.wait (%p2578_p11), %s595_s19, 256  }
  0xb6   : > { %2188 = vsyncadd (%p2578_p11), %s595_s19, 4294967040  ;;  %s3010_s5 = sld [smem:[#allocation27_spill]]  ;;  %s603_s15 = sand.u32 1, %s2412_s29  }
  0xb7   : > { %s604_s2 = scalar_lea.sflag [#allocation6], %s603_s15  ;;  %p3011_p3 = scmp.ne.s32.totalorder %s2986_s14, 0 }
  0xbc   : > { %s605_s24 = sand.u32 1, %s3010_s5  }
  0xbd   : > { %s2663_s25 = sshll.u32 %s605_s24, 4 }
  0xbe   : > { %s607_s10 = scalar_lea.vmem [#allocation5], %s2663_s25 }
  0xbf   : > { %2190 = dma.done.wait (%p3011_p3), %s604_s2, 512  }
  0xc0   : > { %2192 = vsyncadd (%p3011_p3), %s604_s2, 4294966784  ;;  %s616_s18 = scalar_lea.vmem [#allocation7], %s2663_s25  ;;  %p3012_p9 = scmp.eq.s32.totalorder %s2412_s29, 0 }
  0xc2   : > { %2194 = dma.done.wait (%p3012_p9), [#allocation9], 1024   ;;  %p3013_p11 = pmov %p3012_p9 }
  0xc3   : > { %p3014_p4 = pmov %p3012_p9 }
  0xc4   : > { %2196 = vsyncadd (%p3013_p11), [#allocation9], 4294966272 }
  0xc5   : > { %2198 = dma.done.wait (%p3014_p4), [#allocation12], 1024   ;;  %p3015_p13 = pmov %p3014_p4 }
  0xc6   : > { %p3016_p0 = pmov %p3014_p4 }
  0xc7   : > { %2200 = vsyncadd (%p3015_p13), [#allocation12], 4294966272 }
  0xc8   : > { %2202 = dma.done.wait (%p3016_p0), [#allocation15], 512   ;;  %p3017_p1 = pmov %p3016_p0 }
  0xc9   : > { %v2269_v0 = vmov 0.0   ;;  %vm2270_vm0 = vmmov 0   ;;  %v1829_v1 = vld [vmem:[#allocation8 + $0x18] sm:$0xff]   ;;  %v1831_v3 = vld [vmem:[#allocation8 + $0x10] sm:$0xff]   ;;  %v1833_v5 = vld [vmem:[#allocation8 + $0x8] sm:$0xff]   ;;  %vm756_vm1 = vcmask 523264  }
  0xca   : > { %2204 = vsyncadd (%p3017_p1), [#allocation15], 4294966784  ;;  %1588 = vmatprep.subr.bf16.mxu0 %v2269_v0  ;;  %1600 = vmatprep.subr.bf16.mxu1 %v2269_v0  ;;  %v1830_v2 = vld [vmem:[#allocation10 + $0x18] sm:$0xff]   ;;  %v1832_v4 = vld [vmem:[#allocation10 + $0x10] sm:$0xff]   ;;  %s3018_s14 = sld [smem:[#allocation29_spill]]  ;;  %s2740_s16 = sshll.u32 %s2651_s8, 3 }
  0xcb   : > { %1596 = vmatprep.mubr.msk.bf16.mxu0 %vm2270_vm0, %v2269_v0  ;;  %1608 = vmatprep.mubr.msk.bf16.mxu1 %vm2270_vm0, %v2269_v0  ;;  %v1834_v6 = vld [vmem:[#allocation10 + $0x8] sm:$0xff]   ;;  %v1835_v7 = vld [vmem:[#allocation8] sm:$0xff]   ;;  %v1837_v12 = vld [vmem:[#allocation11 + $0x18] sm:$0xff]   ;;  %s3019_s30 = sld [smem:[#allocation30_spill]]  ;;  %vm1141_vm2 = vcmask 519168   ;;  %s688_s5 = scalar_lea.vmem [#allocation16], %s2740_s16 }
  0xcc   : > { %1589 = vmatpush3.bf16.msra.mxu0 %v1829_v1  ;;  %1601 = vmatpush3.bf16.msra.mxu1 %v1830_v2  ;;  %v710_v8 = vld [vmem:[%s2655_s0] sm:$0xff]  ;;  %v711_v9 = vld [vmem:[%s2655_s0 + $0x8] sm:$0xff]  ;;  %s3020_s13 = sld [smem:[#allocation39_spill]]  ;;  %s1190_s24 = sshll.u32 %s688_s5, 4  ;;  %s2763_s24 = int_to_ptr.vmem [resolvable:$true] %s1190_s24 }
  0xcd   : > { %1590 = vmatprep.subr.bf16.mxu0 %v2269_v0  ;;  %1602 = vmatprep.subr.bf16.mxu1 %v2269_v0  ;;  %v1836_v10 = vld [vmem:[#allocation10] sm:$0xff]   ;;  %v712_v11 = vpack.c.bf16 %v711_v9, %v710_v8  ;;  %v1838_v13 = vld [vmem:[#allocation13 + $0x18] sm:$0xff]   ;;  %v1839_v14 = vld [vmem:[#allocation11 + $0x10] sm:$0xff]   ;;  %s3021_s12 = sld [smem:[#allocation41_spill]]  ;;  %s1165_s4 = scalar_lea.sflag [#allocation4], %s2651_s8 }
  0xce   : > { %v1840_v15 = vld [vmem:[#allocation13 + $0x10] sm:$0xff]   ;;  %v1841_v16 = vld [vmem:[#allocation11 + $0x8] sm:$0xff]   ;;  %v1843_v18 = vld [vmem:[#allocation11] sm:$0xff]   ;;  %s3023_s9 = sld [smem:[#allocation43_spill]]  ;;  %p3025_p7 = scmp.ne.s32.totalorder %s3001_s6, 0 }
  0xcf   : > { %v1842_v17 = vld [vmem:[#allocation13 + $0x8] sm:$0xff]   ;;  %v1844_v19 = vld [vmem:[#allocation13] sm:$0xff]   ;;  %v1845_v20 = vld [vmem:[#allocation14 + $0x18] sm:$0xff]   ;;  %s3024_s3 = sld [smem:[#allocation45_spill]] }
  0xd0   : > { %1591 = vmatpush3.bf16.msra.mxu0 %v1831_v3  ;;  %1603 = vmatpush3.bf16.msra.mxu1 %v1832_v4  ;;  %v1846_v21 = vld [vmem:[#allocation14 + $0x10] sm:$0xff]   ;;  %v1847_v22 = vld [vmem:[#allocation14 + $0x8] sm:$0xff]   ;;  %v1848_v23 = vld [vmem:[#allocation14] sm:$0xff]   ;;  %s1544_s17 = sshll.u32 %s3018_s14, 1 }
  0xd1   : > { %1592 = vmatprep.subr.bf16.mxu0 %v2269_v0  ;;  %1604 = vmatprep.subr.bf16.mxu1 %v2269_v0  ;;  %v2730_v26 = vld [vmem:[%s607_s10] sm:$0xff]  ;;  %s1545_s20 = sshll.u32 %s3019_s30, 2  ;;  %v2745_v36 = vld [vmem:[%s607_s10 + $0x8] sm:$0xff]  ;;  %s3022_s10 = sld [smem:[#allocation48_spill]] }
  0xd2   : > { %v1505_v24 = vld [vmem:[%s3020_s13] ss:$0 sm:$0xff]  ;;  %v2749_v39 = vld [vmem:[%s616_s18 + $0x8] sm:$0xff]  ;;  %s1187_s19 = sadd.s32 %s1545_s20, %s1544_s17  ;;  %s2271_s17 = smov [#allocation16]  }
  0xd3   : > { %v1511_v25 = vld [vmem:[%s3021_s12] ss:$0 sm:$0xff]  ;;  %s2753_s0 = sshll.u32 %s1187_s19, 6  ;;  %s2063_s12 = scalar_lea.vmem %s2763_s24, 128 }
  0xd4   : > { %1593 = vmatpush3.bf16.msra.mxu0 %v1833_v5  ;;  %1605 = vmatpush3.bf16.msra.mxu1 %v1834_v6  ;;  %v2734_v29 = vld [vmem:[%s616_s18] sm:$0xff]  ;;  %p2064_p12 = scmp.ne.s32.totalorder %s2763_s24, %s2063_s12  ;;  %s2067_s20 = sshll.u32 %s2271_s17, 4  ;;  %s2068_s20 = int_to_ptr.vmem [resolvable:$false] %s2067_s20 }
  0xd5   : > { %1594 = vmatprep.subr.bf16.mxu0 %v2269_v0  ;;  %1606 = vmatprep.subr.bf16.mxu1 %v2269_v0  ;;  %v1517_v50 = vld [vmem:[%s3023_s9] ss:$0 sm:$0xff]  ;;  %s2069_s19 = scalar_lea.vmem %s2068_s20, 256  ;;  %p2070_p2 = scmp.lt.s32.totalorder %s2763_s24, %s2068_s20 }
  0xd6   : > { %v1523_v51 = vld [vmem:[%s3024_s3] ss:$0 sm:$0xff]  ;;  %p2065_p6 = pnand %p2064_p12, %p3025_p7  ;;  %p2071_p8 = scmp.lt.s32.totalorder %s2069_s19, %s2063_s12 }
  0xd7   : > { %s2761_s18 = scalar_lea.hbm %s3022_s10, %s2753_s0 }
  0xd8   : > { %1595 = vmatpush3.bf16.msra.mxu0 %v1835_v7  ;;  %1607 = vmatpush3.bf16.msra.mxu1 %v1836_v10  ;;  %p2066_p10 = pneg %p2065_p6  ;;  %p2072_p5 = por %p2071_p8, %p2070_p2 }
  0xd9   : > { %1612 = vmatprep.subr.bf16.mxu0 %v2269_v0  ;;  %1624 = vmatprep.subr.bf16.mxu1 %v2269_v0 }
  0xda   : > { %p2073_p3 = pnand %p2072_p5, %p2066_p10 }
  0xdb   : > { %1597 = vmatmul.mubr.msk.bf16.vlgmr.msra.gmra.mxu0 %vm756_vm1, %v712_v11  ;;  %1609 = vmatmul.mubr.msk.bf16.vlgmr.msra.gmra.mxu1 %vm756_vm1, %v712_v11 }
  0xdc   : > { %1613 = vmatpush3.bf16.msra.mxu0 %v1837_v12  ;;  %1625 = vmatpush3.bf16.msra.mxu1 %v1838_v13 }
  0xdd   : > { %1614 = vmatprep.subr.bf16.mxu0 %v2269_v0  ;;  %1626 = vmatprep.subr.bf16.mxu1 %v2269_v0 }
  0xde   : > { %1620 = vmatprep.mubr.msk.bf16.mxu0 %vm2270_vm0, %v2269_v0  ;;  %1632 = vmatprep.mubr.msk.bf16.mxu1 %vm2270_vm0, %v2269_v0 }
  0xe0   : > { %1615 = vmatpush3.bf16.msra.mxu0 %v1839_v14  ;;  %1627 = vmatpush3.bf16.msra.mxu1 %v1840_v15 }
  0xe1   : > { %1616 = vmatprep.subr.bf16.mxu0 %v2269_v0  ;;  %1628 = vmatprep.subr.bf16.mxu1 %v2269_v0 }
  0xe4   : > { %1617 = vmatpush3.bf16.msra.mxu0 %v1841_v16  ;;  %1629 = vmatpush3.bf16.msra.mxu1 %v1842_v17 }
  0xe5   : > { %1618 = vmatprep.subr.bf16.mxu0 %v2269_v0  ;;  %1630 = vmatprep.subr.bf16.mxu1 %v2269_v0 }
  0xe8   : > { %1619 = vmatpush3.bf16.msra.mxu0 %v1843_v18  ;;  %1631 = vmatpush3.bf16.msra.mxu1 %v1844_v19 }
  0xe9   : > { %1636 = vmatprep.subr.bf16.mxu0 %v2269_v0 }
  0xeb   : > { %1621 = vmatmul.mubr.msk.bf16.vlgmr.msra.gmra.mxu0 %vm756_vm1, %v712_v11  ;;  %1633 = vmatmul.mubr.msk.bf16.vlgmr.msra.gmra.mxu1 %vm756_vm1, %v712_v11 }
  0xec   : > { %1637 = vmatpush3.bf16.msra.mxu0 %v1845_v20  ;;  %1644 = vmatprep.mubr.msk.bf16.mxu0 %vm2270_vm0, %v2269_v0 }
  0xed   : > { %1638 = vmatprep.subr.bf16.mxu0 %v2269_v0 }
  0xf0   : > { %1639 = vmatpush3.bf16.msra.mxu0 %v1846_v21 }
  0xf1   : > { %1640 = vmatprep.subr.bf16.mxu0 %v2269_v0 }
  0xf4   : > { %1641 = vmatpush3.bf16.msra.mxu0 %v1847_v22 }
  0xf5   : > { %1642 = vmatprep.subr.bf16.mxu0 %v2269_v0 }
  0xf8   : > { %1643 = vmatpush3.bf16.msra.mxu0 %v1848_v23 }
  0xfb   : > { %1645 = vmatmul.mubr.msk.bf16.vlgmr.msra.gmra.mxu0 %vm756_vm1, %v712_v11 }
 0x19b   : > { %v794_v27 = vpop.f32.mrf.mxu0  ;;  %v876_v30 = vpop.f32.mrf.mxu1 }
 0x19c   : > { %v795_v28 = vadd.f32 %v1505_v24, %v794_v27  ;;  %v877_v31 = vadd.f32 %v1511_v25, %v876_v30 }
 0x19d   : > { %v1598_v32 = vpop.f32.mrf.mxu0  ;;  %v1610_v34 = vpop.f32.mrf.mxu1 }
 0x19e   : > { %v801_v33 = vmul.f32 %v795_v28, %v2730_v26  ;;  %v883_v35 = vmul.f32 %v877_v31, %v2734_v29 }
 0x19f   : > { %v797_v37 = vpop.f32.mrf.mxu0  ;;  %v879_v40 = vpop.f32.mrf.mxu1 }
 0x1a0   : > { %v798_v38 = vadd.f32 %v1505_v24, %v797_v37  ;;  %v885_v41 = vadd.f32 %v883_v35, %v801_v33  ;;  %v880_v42 = vadd.f32 %v1511_v25, %v879_v40 }
 0x1a1   : > { %v1599_v43 = vpop.f32.mrf.mxu0  ;;  %v1611_v45 = vpop.f32.mrf.mxu1 }
 0x1a2   : > { %v802_v44 = vmul.f32 %v798_v38, %v2745_v36  ;;  %v1557_v46 = vpack.c.bf16 %v885_v41, %v885_v41  ;;  %v884_v47 = vmul.f32 %v880_v42, %v2749_v39 }
 0x1a4   : > { %1142 = vst.msk [vmem:[%s688_s5] sm:$0xf] %vm1141_vm2, %v1557_v46  ;;  %v886_v48 = vadd.f32 %v884_v47, %v802_v44 }
 0x1a6   : > { %v1558_v49 = vpack.c.bf16 %v886_v48, %v886_v48 }
 0x1a8   : > { %1143 = vst.msk [vmem:[%s688_s5 + $0x4] sm:$0xf] %vm1141_vm2, %v1558_v49 }
 0x1a9   : > { %2076 = shalt.err (!%p2073_p3)
}
 0x1aa   : > { %s2077_s5 = scalar_lea.hbm %s2761_s18, 128  ;;  %s2081_s14 = scalar_lea.hbm %s3022_s10, 512 }
 0x1ab   : > { %p2078_p9 = scmp.ne.s32.totalorder %s2761_s18, %s2077_s5  ;;  %p2082_p13 = scmp.lt.s32.totalorder %s2761_s18, %s3022_s10 }
 0x1ac   : > { %p2083_p0 = scmp.lt.s32.totalorder %s2081_s14, %s2077_s5 }
 0x1ad   : > { %p2079_p11 = pnand %p2078_p9, %p3025_p7 }
 0x1ae   : > { %p2084_p1 = por %p2083_p0, %p2082_p13 }
 0x1af   : > { %p2080_p4 = pneg %p2079_p11 }
 0x1b1   : > { %p2085_p12 = pnand %p2084_p1, %p2080_p4 }
 0x1b3   : > { %2088 = shalt.err (!%p2085_p12)
}
 0x1b4   : > { %s2272_s11 = smov 64   ;;  %s2273_s13 = smov 4   ;;  %v960_v52 = vpop.f32.mrf.mxu0  ;;  %v1042_v54 = vpop.f32.mrf.mxu1 }
 0x1b5   : > { %1674 = dma.vmem_to_hbm [thread:$0]  (%p3025_p7), %s2763_s24, 128, %s2761_s18, %s1165_s4, %s2272_s11, %s2272_s11, %s2273_s13   ;;  %v961_v53 = vadd.f32 %v1517_v50, %v960_v52  ;;  %v1043_v55 = vadd.f32 %v1523_v51, %v1042_v54 }
 0x1b6   : > { %v1622_v56 = vpop.f32.mrf.mxu0  ;;  %v1634_v58 = vpop.f32.mrf.mxu1  ;;  %s695_s8 = scalar_lea.vmem [#allocation17], %s2740_s16  ;;  %s3026_s4 = sld [smem:[#allocation49_spill]] }
 0x1b7   : > { %v967_v57 = vmul.f32 %v961_v53, %v2730_v26  ;;  %v1049_v59 = vmul.f32 %v1043_v55, %v2734_v29  ;;  %s1208_s24 = sshll.u32 %s695_s8, 4  ;;  %s3027_s19 = sld [smem:[#allocation47_spill]]  ;;  %s2810_s24 = int_to_ptr.vmem [resolvable:$true] %s1208_s24 }
 0x1b8   : > { %v963_v60 = vpop.f32.mrf.mxu0  ;;  %v1045_v62 = vpop.f32.mrf.mxu1  ;;  %s2818_s5 = scalar_lea.sflag [#allocation18], %s603_s15  ;;  %s2089_s25 = scalar_lea.vmem %s2810_s24, 128 }
 0x1b9   : > { %v964_v61 = vadd.f32 %v1517_v50, %v963_v60  ;;  %v1051_v63 = vadd.f32 %v1049_v59, %v967_v57  ;;  %v1046_v0 = vadd.f32 %v1523_v51, %v1045_v62  ;;  %p2090_p6 = scmp.ne.s32.totalorder %s2810_s24, %s2089_s25  ;;  %s2274_s2 = smov [#allocation17]  }
 0x1ba   : > { %v1623_v1 = vpop.f32.mrf.mxu0  ;;  %v1635_v3 = vpop.f32.mrf.mxu1  ;;  %s2093_s14 = sshll.u32 %s2274_s2, 4  ;;  %s2094_s14 = int_to_ptr.vmem [resolvable:$false] %s2093_s14 }
 0x1bb   : > { %v968_v2 = vmul.f32 %v964_v61, %v2745_v36  ;;  %v1559_v4 = vpack.c.bf16 %v1051_v63, %v1051_v63  ;;  %v1050_v5 = vmul.f32 %v1046_v0, %v2749_v39  ;;  %p2091_p10 = pnand %p2090_p6, %p3025_p7  ;;  %s2095_s30 = scalar_lea.vmem %s2094_s14, 256 }
 0x1bc   : > { %s2808_s12 = scalar_lea.hbm %s3026_s4, %s2753_s0  ;;  %p2096_p8 = scmp.lt.s32.totalorder %s2810_s24, %s2094_s14 }
 0x1bd   : > { %1152 = vst.msk [vmem:[%s695_s8] sm:$0xf] %vm1141_vm2, %v1559_v4  ;;  %v1052_v6 = vadd.f32 %v1050_v5, %v968_v2  ;;  %v1529_v8 = vld [vmem:[%s3027_s19] ss:$0 sm:$0xff]  ;;  %p2092_p2 = pneg %p2091_p10  ;;  %p2097_p5 = scmp.lt.s32.totalorder %s2095_s30, %s2089_s25 }
 0x1bf   : > { %v1560_v7 = vpack.c.bf16 %v1052_v6, %v1052_v6  ;;  %p2098_p3 = por %p2097_p5, %p2096_p8 }
 0x1c1   : > { %1153 = vst.msk [vmem:[%s695_s8 + $0x4] sm:$0xf] %vm1141_vm2, %v1560_v7  ;;  %p2099_p9 = pnand %p2098_p3, %p2092_p2 }
 0x1c3   : > { %2102 = shalt.err (!%p2099_p9)
}
 0x1c4   : > { %s2103_s29 = scalar_lea.hbm %s2808_s12, 128  ;;  %s2107_s8 = scalar_lea.hbm %s3026_s4, 512 }
 0x1c5   : > { %p2104_p11 = scmp.ne.s32.totalorder %s2808_s12, %s2103_s29  ;;  %p2108_p0 = scmp.lt.s32.totalorder %s2808_s12, %s3026_s4 }
 0x1c6   : > { %p2109_p1 = scmp.lt.s32.totalorder %s2107_s8, %s2103_s29 }
 0x1c7   : > { %p2105_p4 = pnand %p2104_p11, %p3025_p7 }
 0x1c8   : > { %p2110_p12 = por %p2109_p1, %p2108_p0 }
 0x1c9   : > { %p2106_p13 = pneg %p2105_p4 }
 0x1cb   : > { %p2111_p6 = pnand %p2110_p12, %p2106_p13 }
 0x1cd   : > { %2114 = shalt.err (!%p2111_p6)
}
 0x1ce   : > { %1675 = dma.vmem_to_hbm [thread:$0]  (%p3025_p7), %s2810_s24, 128, %s2808_s12, %s2818_s5, %s2272_s11, %s2272_s11, %s2273_s13   ;;  %v1126_v9 = vpop.f32.mrf.mxu0 }
 0x1cf   : > { %v1127_v10 = vadd.f32 %v1529_v8, %v1126_v9  ;;  %s702_s17 = scalar_lea.vmem [#allocation19], %s2740_s16  ;;  %s3028_s12 = sld [smem:[#allocation50_spill]] }
 0x1d0   : > { %v1646_v11 = vpop.f32.mrf.mxu0  ;;  %s1226_s20 = sshll.u32 %s702_s17, 4  ;;  %s2275_s2 = smov [#allocation19]   ;;  %s2846_s20 = int_to_ptr.vmem [resolvable:$true] %s1226_s20 }
 0x1d1   : > { %v1561_v12 = vpack.c.bf16 %v1127_v10, %v1127_v10  ;;  %s2115_s16 = scalar_lea.vmem %s2846_s20, 128  ;;  %s2119_s14 = sshll.u32 %s2275_s2, 4  ;;  %s2120_s14 = int_to_ptr.vmem [resolvable:$false] %s2119_s14 }
 0x1d2   : > { %v1129_v13 = vpop.f32.mrf.mxu0  ;;  %p2116_p10 = scmp.ne.s32.totalorder %s2846_s20, %s2115_s16  ;;  %s2121_s30 = scalar_lea.vmem %s2120_s14, 256 }
 0x1d3   : > { %1162 = vst.msk [vmem:[%s702_s17] sm:$0xf] %vm1141_vm2, %v1561_v12  ;;  %v1130_v14 = vadd.f32 %v1529_v8, %v1129_v13  ;;  %p2122_p5 = scmp.lt.s32.totalorder %s2846_s20, %s2120_s14  ;;  %p2123_p3 = scmp.lt.s32.totalorder %s2121_s30, %s2115_s16 }
 0x1d4   : > { %v1647_v15 = vpop.f32.mrf.mxu0  ;;  %p2117_p2 = pnand %p2116_p10, %p3025_p7 }
 0x1d5   : > { %v1562_v16 = vpack.c.bf16 %v1130_v14, %v1130_v14  ;;  %s2852_s25 = scalar_lea.hbm %s3028_s12, %s2753_s0  ;;  %p2124_p9 = por %p2123_p3, %p2122_p5 }
 0x1d6   : > { %p2118_p8 = pneg %p2117_p2 }
 0x1d7   : > { %1163 = vst.msk [vmem:[%s702_s17 + $0x4] sm:$0xf] %vm1141_vm2, %v1562_v16 }
 0x1d8   : > { %p2125_p11 = pnand %p2124_p9, %p2118_p8 }
 0x1da   : > { %2128 = shalt.err (!%p2125_p11)
}
 0x1db   : > { %s2129_s0 = scalar_lea.hbm %s2852_s25, 128  ;;  %s2133_s9 = scalar_lea.hbm %s3028_s12, 512 }
 0x1dc   : > { %p2130_p4 = scmp.ne.s32.totalorder %s2852_s25, %s2129_s0  ;;  %p2134_p1 = scmp.lt.s32.totalorder %s2852_s25, %s3028_s12 }
 0x1dd   : > { %p2135_p12 = scmp.lt.s32.totalorder %s2133_s9, %s2129_s0 }
 0x1de   : > { %p2131_p13 = pnand %p2130_p4, %p3025_p7 }
 0x1df   : > { %p2136_p6 = por %p2135_p12, %p2134_p1 }
 0x1e0   : > { %p2132_p0 = pneg %p2131_p13 }
 0x1e2   : > { %p2137_p10 = pnand %p2136_p6, %p2132_p0 }
 0x1e4   : > { %2140 = shalt.err (!%p2137_p10)
}
 0x1e5   : > { %1676 = dma.vmem_to_hbm [thread:$0]  (%p3025_p7), %s2846_s20, 128, %s2852_s25, %s2818_s5, %s2272_s11, %s2272_s11, %s2273_s13  }
 0x1e6 PF: > { %p1727_p2 = scmp.ge.s32.totalorder %s2255_s28, 2  ;;  %s1241_s3 = sand.u32 1, %s2227_s21  }
 0x1e7   : > { %p3029_p8 = scmp.ne.s32.totalorder %s3002_s7, 0  ;;  %s1242_s17 = scalar_lea.sflag [#allocation4], %s1241_s3 }
 0x1e9   : > { %p1707_p5 = pnand %p1727_p2, %p3029_p8 }
 0x1eb   : > { %p1708_p3 = pneg %p1707_p5 }
 0x1ed   : > { %2206 = dma.done.wait (%p1708_p3), %s1242_s17, 128  }
 0x1ee   : > { %2208 = vsyncadd (%p1708_p3), %s1242_s17, 4294967168  ;;  %s3030_s6 = sadd.s32 4294967294, %s2255_s28  }
 0x1ef   : > { %s1250_s19 = sand.u32 1, %s3030_s6  }
 0x1f0   : > { %s1251_s24 = scalar_lea.sflag [#allocation18], %s1250_s19 }
 0x1f1   : > { %2210 = dma.done.wait (%p1708_p3), %s1251_s24, 256  }
 0x1f2   : > { %2212 = vsyncadd (%p1708_p3), %s1251_s24, 4294967040  ;;  %s41_s28 = sadd.s32 1, %s2255_s28   ;;  %s3031_s18 = sld [smem:[#allocation27_spill]] }
 0x1f3   : > { %p38_p7 = scmp.ge.s32.totalorder %s41_s28, 6   ;;  %s3032_s19 = sld [smem:[#allocation28_spill]] }
 0x1f4   : > { %s3033_s20 = sld [smem:[#allocation33_spill]]  ;;  %s3036_s21 = smov %s2231_s22 }
 0x1f5   : > { %s3034_s7 = sld [smem:[#allocation32_spill]]  ;;  %s3037_s22 = smov %s2235_s23 }
 0x1f6   : > { %s3035_s11 = sld [smem:[#allocation34_spill]]  ;;  %s3038_s23 = smov %s2602_s1 }
 0x1f7   : > { %s3039_s24 = smov %s2247_s26  ;;  %s3040_s25 = smov %s2251_s27 }
 0x1f8   :  { %40 = sbr.rel (!%p38_p7) target bundleno = 33 (0x21), region = 193 }
 0x1fb   : > { %s3041_s26 = smov %s3034_s7 }
 0x1fc   : > { %s3042_s27 = smov %s3035_s11 }
 0x1fd   :  { %1265 = vsyncpa [#allocation3], 1 }
 0x1fe   :  { %1267 = vsyncpa [#allocation3 + $0x1], 1 }
 0x1ff   :  { %1268 = vsyncpa [#allocation6], 1 }
 0x200   :  { %1270 = vsyncpa [#allocation6 + $0x1], 1 }
 0x201   :  { %1271 = vsyncpa [#allocation9], 1 }
 0x202   :  { %1272 = vsyncpa [#allocation12], 1 }
 0x203   :  { %1273 = vsyncpa [#allocation15], 1 }
 0x204   :  { %1274 = vsyncpa [#allocation4], 1 }
 0x205   :  { %1276 = vsyncpa [#allocation4 + $0x1], 1 }
 0x206   :  { %1277 = vsyncpa [#allocation18], 1 }
 0x207   :  { %1279 = vsyncpa [#allocation18 + $0x1], 1 }

</bundles_post_ra>
